<compile_context>
chip_gen: v7x
topology: tpu7x:2x2x1
jax: 0.10.0
libtpu: 0.0.40
codegen_flags: <defaults>
</compile_context>

<pallas_src>
import functools

import jax
import jax.numpy as jnp
from jax.experimental import pallas as pl
from jax.experimental.pallas import tpu as pltpu

EPS = 1e-8          # module's self.eps
TEMPERATURE = 1.0   # module's self.temperature
NORM_EPS = 1e-12    # torch.nn.functional.normalize default eps


def _kl_entropy_kernel(logits_ref, sum_prob_ref, sum_plogp_ref, *,
                       n_rows, row_tile, tiles_per_part, needs_mask):
    """Processes one (tm, C) tile of rows; accumulates column-wise sums.

    Outputs (resident accumulators across the 'arbitrary' grid axis, one
    (8, C) block per partition):
      sum_prob_ref  : (8, C) f32 -- sum over this partition's rows of softmax prob
      sum_plogp_ref : (8, C) f32 -- sum over this partition's rows of p * log p
    """
    p_id = pl.program_id(0)   # partition (parallel)
    s_id = pl.program_id(1)   # step within partition (arbitrary / reduction)

    x = logits_ref[...].astype(jnp.float32)          # (tm, C)
    tm, _ = x.shape

    if needs_mask:
        tile_idx = p_id * tiles_per_part + s_id      # un-clamped logical tile id
        row0 = tile_idx * row_tile
        row_ids = row0 + jax.lax.broadcasted_iota(jnp.int32, (tm, 1), 0)
        row_mask = row_ids < n_rows
        x = jnp.where(row_mask, x, 0.0)              # padded rows -> zero rows

    # F.normalize(logits, dim=1): x / max(||x||_2, 1e-12), with the
    # temperature scale folded into the same per-row multiplier.
    sq = jnp.sum(x * x, axis=1, keepdims=True)
    inv_norm = jax.lax.rsqrt(jnp.maximum(sq, NORM_EPS * NORM_EPS))
    if TEMPERATURE != 1.0:
        inv_norm = inv_norm * (1.0 / TEMPERATURE)
    xn = x * inv_norm

    # Numerically stable softmax over dim=1.  The reciprocal is per-row
    # (tm x 1), so the exact (refined) form is essentially free.
    m = jnp.max(xn, axis=1, keepdims=True)
    z = xn - m
    e = jnp.exp(z)
    sum_e = jnp.sum(e, axis=1, keepdims=True)
    prob = e * pl.reciprocal(sum_e, approx=False)

    # log-softmax form: log(prob) = z - log(sum_e) -> one log per row.
    # TODO(synk): this drops the "+eps" inside the log of the original module
    # (torch.log(prob + eps)); the two differ by prob*log1p(eps/prob) <= eps
    # = 1e-8 per element, far below the 1e-5 check tolerance.
    log_p = z - jnp.log(sum_e)
    plogp = prob * log_p

    if needs_mask:
        prob = jnp.where(row_mask, prob, 0.0)
        plogp = jnp.where(row_mask, plogp, 0.0)

    @pl.when(s_id == 0)
    def _():
        sum_prob_ref[...] = jnp.zeros_like(sum_prob_ref)
        sum_plogp_ref[...] = jnp.zeros_like(sum_plogp_ref)

    # Column-wise (axis=0) partial sums accumulated into row 0 of this
    # partition's block; rows 1..7 stay zero and are folded in by the glue.
    sum_prob_ref[0:1, :] += jnp.sum(prob, axis=0, keepdims=True)
    sum_plogp_ref[0:1, :] += jnp.sum(plogp, axis=0, keepdims=True)


def kl_entropy_loss(logits, target, entropy_weight, *,
                    row_tile=512, num_parts=2):
    """JAX/Pallas equivalent of KLEntropyLoss.forward (uniform_type='avg_entropy').

    `target` is accepted for signature parity but (as in the PyTorch module)
    is unused.
    """
    del target
    N, C = logits.shape
    itemsize = jnp.dtype(logits.dtype).itemsize

    # TODO(synk): all_gather_grad_curr(prob) is a cross-process gather with a
    # straight-through gradient; on a single device it is the identity, which
    # is what we implement here.
    # TODO(synk): the debug branch (argmax / torch.unique / logging every 10
    # iters) has no numerical effect on the loss and is omitted.

    # --- tile sizing: large tiles, capped by a VMEM double-buffer budget ----
    # Budget the double-buffered input tile at <=16 MiB so it fits comfortably
    # even inside v7x's 64 MiB physical VMEM (with headroom for outputs and
    # compiler scratch under the explicit 48 MiB scoped limit below).
    input_db_budget = 16 * 1024 * 1024
    max_rows = max(8, (input_db_budget // (2 * C * itemsize)) // 8 * 8)
    n_pad8 = ((N + 7) // 8) * 8                       # no point tiling past N
    tm = max(8, (min(row_tile, max_rows, n_pad8) // 8) * 8)

    total_tiles = pl.cdiv(N, tm)
    n_parts = max(1, min(num_parts, total_tiles))     # per-TensorCore partitions
    tiles_per_part = pl.cdiv(total_tiles, n_parts)
    needs_mask = (N % tm != 0) or (n_parts * tiles_per_part != total_tiles)

    kernel = functools.partial(
        _kl_entropy_kernel, n_rows=N, row_tile=tm,
        tiles_per_part=tiles_per_part, needs_mask=needs_mask)

    def in_map(p, s):
        # Clamp so padded (partition-tail) steps read an in-bounds block; the
        # in-kernel row mask zeroes their contribution.
        return (jnp.minimum(p * tiles_per_part + s, total_tiles - 1), 0)

    sum_prob, sum_plogp = pl.pallas_call(
        kernel,
        out_shape=(jax.ShapeDtypeStruct((n_parts * 8, C), jnp.float32),
                   jax.ShapeDtypeStruct((n_parts * 8, C), jnp.float32)),
        grid_spec=pltpu.PrefetchScalarGridSpec(
            num_scalar_prefetch=0,
            grid=(n_parts, tiles_per_part),
            in_specs=[pl.BlockSpec((tm, C), in_map)],
            out_specs=(pl.BlockSpec((8, C), lambda p, s: (p, 0)),
                       pl.BlockSpec((8, C), lambda p, s: (p, 0)))),
        compiler_params=pltpu.CompilerParams(
            dimension_semantics=("parallel", "arbitrary"),
            vmem_limit_bytes=48 * 1024 * 1024),
    )(logits)

    # entropy = -(p * log p).mean()   (mean over all N*C elements)
    entropy = -jnp.sum(sum_plogp) / jnp.float32(N * C)

    # uniform_type == 'avg_entropy':
    # mean_prob = prob.mean(dim=0); uniform = (mean_prob * log(mean_prob)).sum()
    # NOTE: like the PyTorch original, log(mean_prob) is -inf for a class with
    # exactly zero mean probability; semantics kept identical on purpose.
    mean_prob = jnp.sum(sum_prob, axis=0) / jnp.float32(N)
    uniform = jnp.sum(mean_prob * jnp.log(mean_prob))

    return {
        'kl': (1.0 - entropy_weight) * uniform,
        'entropy': entropy_weight * entropy,
    }


def _reference(logits, entropy_weight):
    """Pure-JAX reference matching the PyTorch module exactly."""
    x = logits.astype(jnp.float32)
    norm = jnp.sqrt(jnp.sum(x * x, axis=1, keepdims=True))
    x = x / jnp.maximum(norm, NORM_EPS)
    x = x / TEMPERATURE
    prob = jax.nn.softmax(x, axis=1)
    log_p = jnp.log(prob + EPS)
    entropy = -jnp.mean(prob * log_p)
    mean_prob = jnp.mean(prob, axis=0)
    uniform = jnp.sum(mean_prob * jnp.log(mean_prob))
    return {
        'kl': (1.0 - entropy_weight) * uniform,
        'entropy': entropy_weight * entropy,
    }


if __name__ == "__main__":
    key = jax.random.PRNGKey(0)
    entropy_weight = 0.5   # deterministic __init__ hyperparameter

    cases = [
        # (N, C, dtype, kwargs)
        (37, 128, jnp.float32, dict()),                         # ragged N, one big tile + mask
        (64, 128, jnp.float32, dict(row_tile=8, num_parts=2)),  # multi-tile, 2 partitions, no mask
        (30, 128, jnp.float32, dict(row_tile=8, num_parts=2)),  # ragged N + partition padding
        (24, 256, jnp.bfloat16, dict(row_tile=16)),             # bf16 logits streamed as bf16
    ]

    for idx, (N, C, dtype, kwargs) in enumerate(cases):
        k1, k2 = jax.random.split(jax.random.fold_in(key, idx))
        logits = jax.random.normal(k1, (N, C), dtype=jnp.float32).astype(dtype)
        target = jax.random.randint(k2, (N,), 0, C)   # unused, parity with forward()

        loss = kl_entropy_loss(logits, target, entropy_weight, **kwargs)
        loss = jax.tree_util.tree_map(jax.block_until_ready, loss)
        ref = _reference(logits, entropy_weight)

        assert jnp.allclose(loss['kl'], ref['kl'], atol=1e-5, rtol=1e-5), \
            (idx, float(loss['kl']), float(ref['kl']))
        assert jnp.allclose(loss['entropy'], ref['entropy'], atol=1e-5, rtol=1e-5), \
            (idx, float(loss['entropy']), float(ref['entropy']))

    print("KERNEL_OK")
</pallas_src>

<mosaic_0001>
module attributes {stable_mosaic.version = 11 : i64} {
  func.func @_kl_entropy_kernel(%arg0: i32, %arg1: i32, %arg2: memref<40x128xf32, #tpu.memory_space<vmem>>, %arg3: memref<8x128xf32, #tpu.memory_space<vmem>>, %arg4: memref<8x128xf32, #tpu.memory_space<vmem>>) attributes {dimension_semantics = [#tpu.dimension_semantics<parallel>, #tpu.dimension_semantics<arbitrary>], iteration_bounds = array<i64: 1, 1>, scalar_prefetch = 0 : i64, scratch_operands = 0 : i64, tpu.core_type = #tpu.core_type<tc>, window_params = [{transform_indices = @transform_0, window_bounds = array<i64: 40, 128>}, {transform_indices = @transform_1, window_bounds = array<i64: 8, 128>}, {transform_indices = @transform_2, window_bounds = array<i64: 8, 128>}]} {
    %c0 = arith.constant 0 : index
    %c0_0 = arith.constant 0 : index
    %0 = vector.load %arg2[%c0, %c0_0] : memref<40x128xf32, #tpu.memory_space<vmem>>, vector<40x128xf32>
    %c1_i32 = arith.constant 1 : i32
    %1 = arith.muli %arg0, %c1_i32 : i32
    %2 = arith.addi %1, %arg1 : i32
    %c40_i32 = arith.constant 40 : i32
    %3 = arith.muli %2, %c40_i32 : i32
    %4 = tpu.iota {dimensions = array<i32: 0>} : vector<40x1xi32>
    %5 = vector.broadcast %3 : i32 to vector<40x1xi32>
    %6 = arith.addi %5, %4 : vector<40x1xi32>
    %c37_i32 = arith.constant 37 : i32
    %7 = vector.broadcast %c37_i32 : i32 to vector<40x1xi32>
    %8 = arith.cmpi slt, %6, %7 : vector<40x1xi32>
    %cst = arith.constant 0.000000e+00 : f32
    %9 = vector.shape_cast %8 : vector<40x1xi1> to vector<40x1xi1>
    %10 = vector.broadcast %9 : vector<40x1xi1> to vector<40x128xi1>
    %11 = vector.broadcast %cst : f32 to vector<40x128xf32>
    %12 = arith.select %10, %0, %11 : vector<40x128xi1>, vector<40x128xf32>
    %13 = arith.mulf %12, %12 : vector<40x128xf32>
    %cst_1 = arith.constant dense<0.000000e+00> : vector<40xf32>
    %14 = vector.multi_reduction <add>, %13, %cst_1 [1] : vector<40x128xf32> to vector<40xf32>
    %15 = vector.shape_cast %14 : vector<40xf32> to vector<40x1xf32>
    %cst_2 = arith.constant 1.000000e-24 : f32
    %16 = vector.broadcast %cst_2 : f32 to vector<40x1xf32>
    %17 = arith.maximumf %15, %16 : vector<40x1xf32>
    %18 = math.rsqrt %17 : vector<40x1xf32>
    %19 = vector.broadcast %18 : vector<40x1xf32> to vector<40x128xf32>
    %20 = arith.mulf %12, %19 : vector<40x128xf32>
    %cst_3 = arith.constant dense<0xFF800000> : vector<40xf32>
    %21 = vector.multi_reduction <maximumf>, %20, %cst_3 [1] : vector<40x128xf32> to vector<40xf32>
    %22 = vector.shape_cast %21 : vector<40xf32> to vector<40x1xf32>
    %23 = vector.broadcast %22 : vector<40x1xf32> to vector<40x128xf32>
    %24 = arith.subf %20, %23 : vector<40x128xf32>
    %25 = math.exp %24 : vector<40x128xf32>
    %cst_4 = arith.constant dense<0.000000e+00> : vector<40xf32>
    %26 = vector.multi_reduction <add>, %25, %cst_4 [1] : vector<40x128xf32> to vector<40xf32>
    %27 = vector.shape_cast %26 : vector<40xf32> to vector<40x1xf32>
    %28 = tpu.reciprocal %27 : vector<40x1xf32> -> vector<40x1xf32>
    %29 = vector.broadcast %28 : vector<40x1xf32> to vector<40x128xf32>
    %30 = arith.mulf %25, %29 : vector<40x128xf32>
    %31 = math.log %27 : vector<40x1xf32>
    %32 = vector.broadcast %31 : vector<40x1xf32> to vector<40x128xf32>
    %33 = arith.subf %24, %32 : vector<40x128xf32>
    %34 = arith.mulf %30, %33 : vector<40x128xf32>
    %cst_5 = arith.constant 0.000000e+00 : f32
    %35 = vector.shape_cast %8 : vector<40x1xi1> to vector<40x1xi1>
    %36 = vector.broadcast %35 : vector<40x1xi1> to vector<40x128xi1>
    %37 = vector.broadcast %cst_5 : f32 to vector<40x128xf32>
    %38 = arith.select %36, %30, %37 : vector<40x128xi1>, vector<40x128xf32>
    %cst_6 = arith.constant 0.000000e+00 : f32
    %39 = vector.shape_cast %8 : vector<40x1xi1> to vector<40x1xi1>
    %40 = vector.broadcast %39 : vector<40x1xi1> to vector<40x128xi1>
    %41 = vector.broadcast %cst_6 : f32 to vector<40x128xf32>
    %42 = arith.select %40, %34, %41 : vector<40x128xi1>, vector<40x128xf32>
    %c0_i32 = arith.constant 0 : i32
    %43 = arith.cmpi eq, %arg1, %c0_i32 : i32
    %44 = arith.extui %43 : i1 to i32
    %c0_i32_7 = arith.constant 0 : i32
    %45 = arith.cmpi ne, %44, %c0_i32_7 : i32
    scf.if %45 {
      %cst_18 = arith.constant 0.000000e+00 : f32
      %56 = vector.broadcast %cst_18 : f32 to vector<8x128xf32>
      %c0_19 = arith.constant 0 : index
      %c0_20 = arith.constant 0 : index
      %57 = vector.load %arg3[%c0_19, %c0_20] : memref<8x128xf32, #tpu.memory_space<vmem>>, vector<8x128xf32>
      tpu.vector_store %arg3[%c0_19, %c0_20], %56 {strides = array<i32>} : memref<8x128xf32, #tpu.memory_space<vmem>>, vector<8x128xf32>,
      %cst_21 = arith.constant 0.000000e+00 : f32
      %58 = vector.broadcast %cst_21 : f32 to vector<8x128xf32>
      %c0_22 = arith.constant 0 : index
      %c0_23 = arith.constant 0 : index
      %59 = vector.load %arg4[%c0_22, %c0_23] : memref<8x128xf32, #tpu.memory_space<vmem>>, vector<8x128xf32>
      tpu.vector_store %arg4[%c0_22, %c0_23], %58 {strides = array<i32>} : memref<8x128xf32, #tpu.memory_space<vmem>>, vector<8x128xf32>,
    } else {
    }
    %c0_8 = arith.constant 0 : index
    %c0_9 = arith.constant 0 : index
    %46 = vector.load %arg3[%c0_8, %c0_9] : memref<8x128xf32, #tpu.memory_space<vmem>>, vector<1x128xf32>
    %cst_10 = arith.constant dense<0.000000e+00> : vector<128xf32>
    %47 = vector.multi_reduction <add>, %38, %cst_10 [0] : vector<40x128xf32> to vector<128xf32>
    %48 = vector.shape_cast %47 : vector<128xf32> to vector<1x128xf32>
    %49 = arith.addf %46, %48 : vector<1x128xf32>
    %c0_11 = arith.constant 0 : index
    %c0_12 = arith.constant 0 : index
    %50 = vector.load %arg3[%c0_11, %c0_12] : memref<8x128xf32, #tpu.memory_space<vmem>>, vector<1x128xf32>
    tpu.vector_store %arg3[%c0_11, %c0_12], %49 {strides = array<i32>} : memref<8x128xf32, #tpu.memory_space<vmem>>, vector<1x128xf32>,
    %c0_13 = arith.constant 0 : index
    %c0_14 = arith.constant 0 : index
    %51 = vector.load %arg4[%c0_13, %c0_14] : memref<8x128xf32, #tpu.memory_space<vmem>>, vector<1x128xf32>
    %cst_15 = arith.constant dense<0.000000e+00> : vector<128xf32>
    %52 = vector.multi_reduction <add>, %42, %cst_15 [0] : vector<40x128xf32> to vector<128xf32>
    %53 = vector.shape_cast %52 : vector<128xf32> to vector<1x128xf32>
    %54 = arith.addf %51, %53 : vector<1x128xf32>
    %c0_16 = arith.constant 0 : index
    %c0_17 = arith.constant 0 : index
    %55 = vector.load %arg4[%c0_16, %c0_17] : memref<8x128xf32, #tpu.memory_space<vmem>>, vector<1x128xf32>
    tpu.vector_store %arg4[%c0_16, %c0_17], %54 {strides = array<i32>} : memref<8x128xf32, #tpu.memory_space<vmem>>, vector<1x128xf32>,
    return
  }
  func.func @transform_0(%arg0: i32, %arg1: i32) -> (i32, i32) {
    %c1_i32 = arith.constant 1 : i32
    %0 = arith.muli %arg0, %c1_i32 : i32
    %1 = arith.addi %0, %arg1 : i32
    %c0_i32 = arith.constant 0 : i32
    %2 = arith.minsi %1, %c0_i32 : i32
    %c0_i32_0 = arith.constant 0 : i32
    %c0_i32_1 = arith.constant 0 : i32
    return %2, %c0_i32_0 : i32, i32
  }
  func.func @transform_1(%arg0: i32, %arg1: i32) -> (i32, i32) {
    %c0_i32 = arith.constant 0 : i32
    %c0_i32_0 = arith.constant 0 : i32
    return %arg0, %c0_i32 : i32, i32
  }
  func.func @transform_2(%arg0: i32, %arg1: i32) -> (i32, i32) {
    %c0_i32 = arith.constant 0 : i32
    %c0_i32_0 = arith.constant 0 : i32
    return %arg0, %c0_i32 : i32, i32
  }
}

</mosaic_0001>

<bundles_post_ra>
// kernel: tpu_custom_call.1
= control target key start
LH: loop header
LB: loop body
LE: loop exit
PB: predicated region body
PF: predicated region fallthrough
CT: control target
= control target key end

     0   :  { %8 = vsyncpa [#allocation3], 0  ;;  %s447_s0 = inlined_call_operand.hbm [shape: f32[37,128], index: 0, kind: input, shape index: {}]   ;;  %s448_s1 = inlined_call_operand.hbm [shape: f32[8,128], index: 1, kind: output, shape index: {0}]   ;;  %s449_s2 = inlined_call_operand.hbm [shape: f32[8,128], index: 2, kind: output, shape index: {1}]  }
   0x1   :  { %9 = vsyncpa [#allocation4], 0 }
   0x2   :  { %10 = vsyncpa [#allocation7], 0  ;;  %s361_s9 = smov [#allocation2]   ;;  %s289_s13 = scalar_lea.hbm %s447_s0, 640 }
   0x3   :  { %s22_s10 = sshll.u32 %s361_s9, 4  ;;  %p290_p0 = scmp.ne.s32.totalorder %s447_s0, %s289_s13  ;;  %s23_s10 = int_to_ptr.vmem [resolvable:$true] %s22_s10 }
   0x4   :  { %p293_p1 = scmp.lt.u32.totalorder %s289_s13, %s447_s0 }
   0x6   :  { %p295_p2 = pnand %p293_p1, %p290_p0 }
   0x8   :  { %298 = shalt.err (!%p295_p2)
}
   0x9   :  { %s299_s18 = scalar_lea.vmem %s23_s10, 640  ;;  %p304_p4 = scmp.lt.s32.totalorder %s23_s10, %s23_s10 }
   0xa   :  { %p300_p3 = scmp.ne.s32.totalorder %s23_s10, %s299_s18  ;;  %p305_p5 = scmp.lt.s32.totalorder %s299_s18, %s299_s18 }
   0xc   :  { %p306_p6 = por %p305_p5, %p304_p4 }
   0xe   :  { %p307_p7 = pnand %p306_p6, %p300_p3 }
  0x10   :  { %310 = shalt.err (!%p307_p7)
}
  0x11   :  { %s362_s19 = smov 128   ;;  %s363_s20 = smov 8  }
  0x12   :  { %28 = dma.hbm_to_vmem [thread:$0]  %s447_s0, 640, %s23_s10, [#allocation3], %s362_s19, %s362_s19, %s363_s20  }
  0x13   :  { %355 = dma.done.wait [#allocation3], 640  }
  0x14   :  { %356 = vsyncadd [#allocation3], 4294966656  ;;  %v43_v0 = vlaneseq  ;;  %v36_v3 = vld [vmem:[#allocation2] sm:$0xff]  ;;  %v38_v4 = vld [vmem:[#allocation2 + $0x10] sm:$0xff]  ;;  %v364_v54 = vmov 0.0   ;;  %s365_s0 = smov [#allocation5]  }
  0x15   :  { %v37_v5 = vld [vmem:[#allocation2 + $0x8] sm:$0xff]  ;;  %v75_v6 = vmul.f32 %v36_v3, %v36_v3  ;;  %v77_v7 = vmul.f32 %v38_v4, %v38_v4  ;;  %v39_v8 = vld [vmem:[#allocation2 + $0x18] sm:$0xff]  ;;  %v40_v9 = vld [vmem:[#allocation2 + $0x20] sm:$0xff]  ;;  %184 = vst [vmem:[#allocation5] sm:$0xff] %v364_v54  ;;  %s218_s23 = sshll.u32 %s365_s0, 4  ;;  %s366_s24 = smov [#allocation6]   ;;  %s219_s23 = int_to_ptr.vmem [resolvable:$true] %s218_s23 }
  0x16   :  { %v44_v1 = vshrl.u32 %v43_v0, 7  ;;  %v76_v10 = vmul.f32 %v37_v5, %v37_v5  ;;  %v78_v11 = vmul.f32 %v39_v8, %v39_v8  ;;  %185 = vst [vmem:[#allocation6] sm:$0xff] %v364_v54  ;;  %s228_s25 = sshll.u32 %s366_s24, 4  ;;  %s311_s26 = scalar_lea.vmem %s219_s23, 128  ;;  %s229_s25 = int_to_ptr.vmem [resolvable:$true] %s228_s25 }
  0x17   :  { %80 = vadd.xlane.f32.xlu0 %v75_v6  ;;  %84 = vadd.xlane.f32.xlu1 %v77_v7  ;;  %p312_p8 = scmp.ne.s32.totalorder %s219_s23, %s311_s26  ;;  %p316_p9 = scmp.lt.s32.totalorder %s219_s23, %s219_s23 }
  0x18   :  { %v394_v2 = vadd.s32 32, %v44_v1  ;;  %p317_p10 = scmp.lt.s32.totalorder %s311_s26, %s311_s26 }
  0x1a   :  { %vm59_vm0 = vcmp.lt.s32.totalorder %v394_v2, 37  ;;  %p318_p11 = por %p317_p10, %p316_p9 }
  0x1b   :  { %v74_v12 = vsel %vm59_vm0, %v40_v9, 0.0  ;;  %82 = vadd.xlane.f32.xlu0 %v76_v10  ;;  %86 = vadd.xlane.f32.xlu1 %v78_v11 }
  0x1c   :  { %v79_v13 = vmul.f32 %v74_v12, %v74_v12  ;;  %p319_p12 = pnand %p318_p11, %p312_p8 }
  0x1f   :  { %88 = vadd.xlane.f32.xlu0 %v79_v13 }
  0xa4   :  { %v81_v14 = vpop.xlane.xlu0 %80  ;;  %v85_v15 = vpop.xlane.xlu1 %84 }
  0xa5   :  { %v90_v16 = vmax.f32 %v81_v14, 1e-24  ;;  %v92_v17 = vmax.f32 %v85_v15, 1e-24 }
  0xa7   :  { %249 = vrsqrt.f32 %v90_v16 }
  0xa8   :  { %251 = vrsqrt.f32 %v92_v17  ;;  %v83_v18 = vpop.xlane.xlu0 %82  ;;  %v87_v19 = vpop.xlane.xlu1 %86 }
  0xa9   :  { %v91_v20 = vmax.f32 %v83_v18, 1e-24  ;;  %v93_v21 = vmax.f32 %v87_v19, 1e-24 }
  0xab   :  { %253 = vrsqrt.f32 %v91_v20 }
  0xac   :  { %255 = vrsqrt.f32 %v93_v21  ;;  %v89_v22 = vpop.xlane.xlu0 %88 }
  0xad   :  { %v94_v23 = vmax.f32 %v89_v22, 1e-24 }
  0xaf   :  { %257 = vrsqrt.f32 %v94_v23 }
  0xb1   :  { %v250_v24 = vpop.eup %249 }
  0xb2   :  { %v252_v25 = vpop.eup %251  ;;  %v100_v26 = vmul.f32 %v250_v24, %v36_v3 }
  0xb3   :  { %v102_v27 = vmul.f32 %v252_v25, %v38_v4 }
  0xb4   :  { %105 = vmax.xlane.f32.xlu1 %v100_v26 }
  0xb5   :  { %v254_v28 = vpop.eup %253 }
  0xb6   :  { %v256_v29 = vpop.eup %255  ;;  %v101_v30 = vmul.f32 %v254_v28, %v37_v5 }
  0xb7   :  { %v103_v31 = vmul.f32 %v256_v29, %v39_v8 }
  0xb8   :  { %109 = vmax.xlane.f32.xlu1 %v102_v27  ;;  %107 = vmax.xlane.f32.xlu0 %v101_v30 }
  0xb9   :  { %v258_v32 = vpop.eup %257 }
  0xba   :  { %v104_v33 = vmul.f32 %v258_v32, %v74_v12 }
  0xbc   :  { %111 = vmax.xlane.f32.xlu0 %v103_v31  ;;  %113 = vmax.xlane.f32.xlu1 %v104_v33 }
 0x141   :  { %v106_v34 = vpop.xlane.xlu1 %105 }
 0x142   :  { %v399_v35 = vsub.f32 %v100_v26, %v106_v34 }
 0x144   :  { %v120_v36 = vmul.f32 1.442695, %v399_v35 }
 0x145   :  { %v110_v37 = vpop.xlane.xlu1 %109  ;;  %v108_v38 = vpop.xlane.xlu0 %107 }
 0x146   :  { %259 = vpow2.f32 %v120_v36  ;;  %v402_v39 = vsub.f32 %v102_v27, %v110_v37  ;;  %v404_v40 = vsub.f32 %v101_v30, %v108_v38 }
 0x148   :  { %v124_v41 = vmul.f32 1.442695, %v402_v39  ;;  %v122_v42 = vmul.f32 1.442695, %v404_v40 }
 0x149   :  { %v114_v43 = vpop.xlane.xlu1 %113  ;;  %v112_v44 = vpop.xlane.xlu0 %111 }
 0x14a   :  { %261 = vpow2.f32 %v124_v41  ;;  %v408_v45 = vsub.f32 %v104_v33, %v114_v43  ;;  %v410_v46 = vsub.f32 %v103_v31, %v112_v44 }
 0x14b   :  { %263 = vpow2.f32 %v122_v42 }
 0x14c   :  { %v128_v47 = vmul.f32 1.442695, %v408_v45  ;;  %v126_v48 = vmul.f32 1.442695, %v410_v46 }
 0x14e   :  { %265 = vpow2.f32 %v128_v47 }
 0x14f   :  { %267 = vpow2.f32 %v126_v48 }
 0x150   :  { %v260_v49 = vpop.eup %259 }
 0x151   :  { %130 = vadd.xlane.f32.xlu0 %v260_v49 }
 0x154   :  { %v262_v50 = vpop.eup %261 }
 0x155   :  { %v264_v51 = vpop.eup %263  ;;  %134 = vadd.xlane.f32.xlu0 %v262_v50 }
 0x156   :  { %132 = vadd.xlane.f32.xlu1 %v264_v51 }
 0x158   :  { %v266_v52 = vpop.eup %265 }
 0x159   :  { %v268_v53 = vpop.eup %267  ;;  %138 = vadd.xlane.f32.xlu0 %v266_v52 }
 0x15a   :  { %136 = vadd.xlane.f32.xlu1 %v268_v53 }
 0x1de   :  { %v131_v55 = vpop.xlane.xlu0 %130 }
 0x1df   :  { %269 = vlog2.f32 %v131_v55 }
 0x1e0   :  { %271 = vrcp.f32 %v131_v55 }
 0x1e2   :  { %v135_v56 = vpop.xlane.xlu0 %134 }
 0x1e3   :  { %v133_v57 = vpop.xlane.xlu1 %132  ;;  %273 = vrcp.f32 %v135_v56 }
 0x1e4   :  { %275 = vrcp.f32 %v133_v57 }
 0x1e5   :  { %277 = vlog2.f32 %v133_v57 }
 0x1e6   :  { %279 = vlog2.f32 %v135_v56  ;;  %v139_v58 = vpop.xlane.xlu0 %138 }
 0x1e7   :  { %v137_v59 = vpop.xlane.xlu1 %136  ;;  %281 = vrcp.f32 %v139_v58 }
 0x1e8   :  { %283 = vrcp.f32 %v137_v59 }
 0x1e9   :  { %285 = vlog2.f32 %v137_v59  ;;  %v270_v60 = vpop.eup %269 }
 0x1ea   :  { %287 = vlog2.f32 %v139_v58  ;;  %v272_v61 = vpop.eup %271  ;;  %v151_v62 = vmul.f32 0.6931472, %v270_v60 }
 0x1eb   :  { %v145_v3 = vmul.f32 %v272_v61, %v260_v49 }
 0x1ec   :  { %v160_v6 = vsub.f32 %v399_v35, %v151_v62 }
 0x1ed   :  { %v274_v63 = vpop.eup %273 }
 0x1ee   :  { %v276_v0 = vpop.eup %275  ;;  %v147_v10 = vmul.f32 %v274_v63, %v262_v50  ;;  %v165_v20 = vmul.f32 %v160_v6, %v145_v3  ;;  %v199_v50 = vld [vmem:[#allocation6] sm:$0x1] }
 0x1ef   :  { %v278_v1 = vpop.eup %277  ;;  %v146_v4 = vmul.f32 %v276_v0, %v264_v51 }
 0x1f0   :  { %v280_v5 = vpop.eup %279  ;;  %v153_v7 = vmul.f32 0.6931472, %v278_v1 }
 0x1f1   :  { %v282_v8 = vpop.eup %281  ;;  %v187_v9 = vadd.f32 %v146_v4, %v145_v3  ;;  %v155_v11 = vmul.f32 0.6931472, %v280_v5 }
 0x1f2   :  { %v284_v12 = vpop.eup %283  ;;  %v161_v13 = vsub.f32 %v404_v40, %v153_v7  ;;  %v149_v14 = vmul.f32 %v282_v8, %v266_v52 }
 0x1f3   :  { %v286_v15 = vpop.eup %285  ;;  %v162_v16 = vsub.f32 %v402_v39, %v155_v11  ;;  %v188_v17 = vadd.f32 %v187_v9, %v147_v10  ;;  %v148_v18 = vmul.f32 %v284_v12, %v268_v53 }
 0x1f4   :  { %v288_v19 = vpop.eup %287  ;;  %v166_v21 = vmul.f32 %v161_v13, %v146_v4  ;;  %v157_v22 = vmul.f32 0.6931472, %v286_v15  ;;  %v174_v23 = vsel %vm59_vm0, %v149_v14, 0.0 }
 0x1f5   :  { %v189_v24 = vadd.f32 %v188_v17, %v148_v18  ;;  %v159_v25 = vmul.f32 0.6931472, %v288_v19  ;;  %v167_v27 = vmul.f32 %v162_v16, %v147_v10 }
 0x1f6   :  { %v200_v26 = vadd.f32 %v166_v21, %v165_v20  ;;  %v163_v28 = vsub.f32 %v410_v46, %v157_v22  ;;  %v186_v46 = vld [vmem:[#allocation5] sm:$0x1] }
 0x1f7   :  { %v164_v29 = vsub.f32 %v408_v45, %v159_v25  ;;  %v190_v30 = vadd.f32 %v189_v24, %v174_v23 }
 0x1f8   :  { %v201_v31 = vadd.f32 %v200_v26, %v167_v27  ;;  %v168_v32 = vmul.f32 %v163_v28, %v148_v18 }
 0x1f9   :  { %v169_v33 = vmul.f32 %v164_v29, %v149_v14  ;;  %v191_v34 = vrot.slane %v190_v30, 4 }
 0x1fa   :  { %v202_v35 = vadd.f32 %v201_v31, %v168_v32 }
 0x1fb   :  { %v179_v36 = vsel %vm59_vm0, %v169_v33, 0.0  ;;  %v192_v37 = vadd.f32 %v191_v34, %v190_v30 }
 0x1fc   :  { %v203_v38 = vadd.f32 %v202_v35, %v179_v36 }
 0x1fd   :  { %v193_v39 = vrot.slane %v192_v37, 2 }
 0x1fe   :  { %v204_v40 = vrot.slane %v203_v38, 4 }
 0x1ff   :  { %v194_v41 = vadd.f32 %v193_v39, %v192_v37 }
 0x200   :  { %v205_v42 = vadd.f32 %v204_v40, %v203_v38 }
 0x201   :  { %v195_v43 = vrot.slane %v194_v41, 1 }
 0x202   :  { %v206_v44 = vrot.slane %v205_v42, 2 }
 0x203   :  { %v196_v45 = vadd.f32 %v195_v43, %v194_v41 }
 0x204   :  { %v207_v47 = vadd.f32 %v206_v44, %v205_v42 }
 0x205   :  { %v197_v48 = vadd.f32 %v196_v45, %v186_v46 }
 0x206   :  { %v208_v49 = vrot.slane %v207_v47, 1 }
 0x207   :  { %198 = vst [vmem:[#allocation5] sm:$0x1] %v197_v48 }
 0x208   :  { %322 = shalt.err (!%p319_p12)
}
 0x209   :  { %s323_s29 = scalar_lea.hbm %s448_s1, 128 }
 0x20a   :  { %p324_p13 = scmp.ne.s32.totalorder %s448_s1, %s323_s29  ;;  %p327_p0 = scmp.lt.u32.totalorder %s323_s29, %s448_s1 }
 0x20c   :  { %p329_p1 = pnand %p327_p0, %p324_p13 }
 0x20e   :  { %332 = shalt.err (!%p329_p1)
}
 0x20f   :  { %221 = dma.vmem_to_hbm [thread:$0]  %s219_s23, 128, %s448_s1, [#allocation4]   ;;  %v209_v2 = vadd.f32 %v208_v49, %v207_v47 }
 0x210   :  { %s333_s8 = scalar_lea.vmem %s229_s25, 128  ;;  %p338_p3 = scmp.lt.s32.totalorder %s229_s25, %s229_s25 }
 0x211   :  { %v210_v51 = vadd.f32 %v209_v2, %v199_v50  ;;  %p334_p2 = scmp.ne.s32.totalorder %s229_s25, %s333_s8  ;;  %p339_p4 = scmp.lt.s32.totalorder %s333_s8, %s333_s8 }
 0x213   :  { %211 = vst [vmem:[#allocation6] sm:$0x1] %v210_v51  ;;  %p340_p5 = por %p339_p4, %p338_p3 }
 0x215   :  { %p341_p6 = pnand %p340_p5, %p334_p2 }
 0x217   :  { %344 = shalt.err (!%p341_p6)
}
 0x218   :  { %s345_s11 = scalar_lea.hbm %s449_s2, 128 }
 0x219   :  { %p346_p7 = scmp.ne.s32.totalorder %s449_s2, %s345_s11  ;;  %p349_p8 = scmp.lt.u32.totalorder %s345_s11, %s449_s2 }
 0x21b   :  { %p351_p9 = pnand %p349_p8, %p346_p7 }
 0x21d   :  { %354 = shalt.err (!%p351_p9)
}
 0x21e   :  { %231 = dma.vmem_to_hbm [thread:$0]  %s229_s25, 128, %s449_s2, [#allocation7]  }
 0x21f   :  { %357 = dma.done.wait [#allocation4], 128  }
 0x220   :  { %358 = vsyncadd [#allocation4], 4294967168 }
 0x221   :  { %359 = dma.done.wait [#allocation7], 128  }
 0x222   :  { %360 = vsyncadd [#allocation7], 4294967168 }
 0x223   :  { %238 = vsyncpa [#allocation3], 1 }
 0x224   :  { %239 = vsyncpa [#allocation4], 1 }
 0x225   :  { %240 = vsyncpa [#allocation7], 1 }

</bundles_post_ra>
